<compile_context>
chip_gen: v6e
topology: v6e:2x2x1
jax: 0.10.0
libtpu: 0.0.40
codegen_flags: <defaults>
</compile_context>

<pallas_src>
import math

import jax
import jax.numpy as jnp
import numpy as np
from jax.experimental import pallas as pl
from jax.experimental.pallas import tpu as pltpu


def _round_up(x: int, m: int) -> int:
    return ((x + m - 1) // m) * m


# ---------------------------------------------------------------------------
# Kernel 1: duplicate_mode forward  y = pose[:, 0:1, :].repeat(1, seq_len, 1)
#   Lane-dense formulation: input (tb, d) first-timestep rows, output the
#   flattened (tb, seq*d) row (last dim >= 128 at realistic shapes), produced
#   with jnp.tile along lanes.  Wrapper reshapes back to (bs, seq, d).
# ---------------------------------------------------------------------------
def _duplicate_kernel(first_ref, out_ref):
    seq = out_ref.shape[1] // first_ref.shape[1]
    out_ref[...] = jnp.tile(first_ref[...], (1, seq))


def duplicate_pose_forward(pose: jax.Array) -> jax.Array:
    """Exact semantics of the PyTorch duplicate_mode branch."""
    bs, seq, d = pose.shape
    # Only timestep 0 reaches the kernel (the full pose is never DMA'd).
    first = pose[:, 0, :]                              # (bs, d)
    # Batch grid (parallel) for large bs; one block at small bs.
    tb = bs if bs <= 256 else 256                      # 256 % 8 == 0
    grid = (pl.cdiv(bs, tb),)
    # NOTE: at toy shapes this kernel is pure dispatch overhead and XLA's
    # fused broadcast would be equivalent; the kernel form matters at large
    # bs*seq*d where the lane-dense flattened output avoids masked stores.
    out_flat = pl.pallas_call(
        _duplicate_kernel,
        out_shape=jax.ShapeDtypeStruct((bs, seq * d), pose.dtype),
        grid=grid,
        in_specs=[pl.BlockSpec((tb, d), lambda i: (i, 0))],
        out_specs=pl.BlockSpec((tb, seq * d), lambda i: (i, 0)),
        compiler_params=pltpu.CompilerParams(
            dimension_semantics=("parallel",)),
    )(first)
    return out_flat.reshape(bs, seq, d)


# ---------------------------------------------------------------------------
# Kernel 2: encoder_post_process_projector  (Linear 1344 -> num_hiddens)
#   concat fused into the kernel:  out = bf16(x1) @ W1 + bf16(x2) @ W2 + b
#   x1: multimodal_embeds tile (TM, 768), x2: gradcam tile (TM, 576)
#   W1/W2/bias stay resident in VMEM across the M grid (index_map -> (0, 0)).
# ---------------------------------------------------------------------------
def _projector_kernel(x1_ref, x2_ref, w1_ref, w2_ref, b_ref, o_ref):
    # Cast activation tiles to the weight dtype (bf16) in-kernel: a cheap VPU
    # op hidden under the input DMA, instead of a separate XLA cast pass that
    # would double the input HBM traffic.
    x1 = x1_ref[...].astype(w1_ref.dtype)
    x2 = x2_ref[...].astype(w2_ref.dtype)
    acc = jnp.dot(x1, w1_ref[...], preferred_element_type=jnp.float32)
    acc = acc + jnp.dot(x2, w2_ref[...], preferred_element_type=jnp.float32)
    # Bias add in f32 before the final (bf16) cast.
    o_ref[...] = (acc + b_ref[...]).astype(o_ref.dtype)


def projector_forward(x1: jax.Array, x2: jax.Array,
                      w1: jax.Array, w2: jax.Array, b: jax.Array,
                      *, block_m: int = 1024,
                      out_dtype=jnp.bfloat16) -> jax.Array:
    """Tiled over M; weights/bias pinned in VMEM; lane-padded bf16 output."""
    M, K1 = x1.shape
    M2, K2 = x2.shape
    assert M == M2
    Np = w1.shape[1]
    assert w1.shape == (K1, Np) and w2.shape == (K2, Np) and b.shape == (1, Np)
    assert Np % 128 == 0, "output last dim must be lane-dense (multiple of 128)"

    # Tile selection:
    #  * M <= 256: single tile (rounded to sublane multiple).
    #  * M  > 256: guarantee >= 2 grid steps so dimension_semantics=("parallel",)
    #    can shard across both v7x TensorCores, capped at block_m.
    #  block_m default 1024 fits every generation's VMEM with the explicit
    #  limit below; sweep 512/1024/2048 on v6e if chasing the last few %.
    if M > 256:
        tm = min(block_m, _round_up(pl.cdiv(M, 2), 8))
    else:
        tm = min(block_m, _round_up(M, 8))
    grid = (pl.cdiv(M, tm),)

    x_bytes = jnp.dtype(x1.dtype).itemsize
    w_bytes = jnp.dtype(w1.dtype).itemsize
    o_bytes = jnp.dtype(out_dtype).itemsize

    # Footprint: double-buffered activation/output tiles + (double-buffered)
    # resident weights + bias.  Explicit vmem_limit_bytes so tm up to 2048
    # works even under v5e's 16 MiB scoped default.
    # TODO(synk): mark the constant-index W1/W2/bias BlockSpecs with
    # pipeline_mode=pl.Buffered(1) (single-buffered residents) once verified
    # on the target jax version; saves ~0.35 MiB of VMEM at Np=128.
    vmem_bytes = (2 * tm * (K1 + K2) * x_bytes      # x1 + x2 tiles
                  + 2 * tm * Np * o_bytes           # output tiles
                  + 2 * (K1 + K2) * Np * w_bytes    # resident weights
                  + 2 * Np * 4)                     # bias
    vmem_limit = min(max(int(vmem_bytes * 1.5) + (4 << 20), 16 << 20), 60 << 20)

    cost = pl.CostEstimate(
        flops=2 * M * (K1 + K2) * Np,
        transcendentals=0,
        bytes_accessed=(M * (K1 + K2) * x_bytes
                        + (K1 + K2) * Np * w_bytes
                        + Np * 4
                        + M * Np * o_bytes))

    return pl.pallas_call(
        _projector_kernel,
        out_shape=jax.ShapeDtypeStruct((M, Np), out_dtype),
        grid=grid,
        in_specs=[
            pl.BlockSpec((tm, K1), lambda i: (i, 0)),   # x1 tiles stream over M
            pl.BlockSpec((tm, K2), lambda i: (i, 0)),   # x2 tiles stream over M
            pl.BlockSpec((K1, Np), lambda i: (0, 0)),   # W1 resident
            pl.BlockSpec((K2, Np), lambda i: (0, 0)),   # W2 resident
            pl.BlockSpec((1, Np), lambda i: (0, 0)),    # bias resident
        ],
        out_specs=pl.BlockSpec((tm, Np), lambda i: (i, 0)),
        compiler_params=pltpu.CompilerParams(
            # Independent M tiles -> megacore / dual-TC sharding on v7x.
            dimension_semantics=("parallel",),
            vmem_limit_bytes=vmem_limit,
        ),
        cost_estimate=cost,
    )(x1, x2, w1, w2, b)


# ---------------------------------------------------------------------------
# Module-level wrapper mirroring MyNetworkV002
# ---------------------------------------------------------------------------
class MyNetworkV002Pallas:
    """Pallas re-implementation of the in-module compute of MyNetworkV002."""

    GRADCAM_FEATURE_DIM = 576          # 24x24 gradcam map, flattened (dims 2..3)
    MULTIMODAL_EMBED_DIM = 768         # BLIP base multimodal embedding width
    PROJECTOR_IN = 1344                # 768 + 576 (nn.Linear(1344, num_hiddens))
    LANE = 128

    def __init__(self, num_hiddens: int = 32, duplicate_mode: bool = False,
                 key: jax.Array | None = None,
                 compute_dtype=jnp.bfloat16, block_m: int = 1024):
        self.duplicate_mode = duplicate_mode
        self.num_hiddens = num_hiddens
        self.compute_dtype = compute_dtype
        self.block_m = block_m
        if key is None:
            key = jax.random.PRNGKey(0)
        kw, kb = jax.random.split(key)

        fan_in, fan_out = self.PROJECTOR_IN, num_hiddens
        # xavier_uniform_ weight init (as applied by xavier_init_weights).
        limit = math.sqrt(6.0 / (fan_in + fan_out))
        w_full = jax.random.uniform(kw, (fan_in, fan_out), jnp.float32,
                                    minval=-limit, maxval=limit)
        # nn.Linear default bias init: U(-1/sqrt(fan_in), 1/sqrt(fan_in)).
        b_limit = 1.0 / math.sqrt(fan_in)
        b_full = jax.random.uniform(kb, (fan_out,), jnp.float32,
                                    minval=-b_limit, maxval=b_limit)
        self._set_projector_params(w_full, b_full)

        # TODO(synk): frozen BLIP 'blip_feature_extractor' encoder, the
        # 'blip_image_text_matching' gradcam model, and the external `decoder`
        # are pretrained nets outside this module's own parameters; no Pallas
        # equivalent is attempted here.

    # --- parameter handling --------------------------------------------------
    def _set_projector_params(self, w_in_out: jax.Array, bias: jax.Array):
        """w_in_out: (1344, num_hiddens) f32, bias: (num_hiddens,) f32."""
        fan_in, fan_out = w_in_out.shape
        assert fan_in == self.PROJECTOR_IN and fan_out == self.num_hiddens
        self.proj_w = w_in_out                # master (K, N) f32
        self.proj_b = bias                    # master (N,) f32
        # Pre-split / lane-pad / cast once (weights stay resident in VMEM).
        n_pad = _round_up(fan_out, self.LANE)
        self.n_pad = n_pad
        w_pad = jnp.zeros((fan_in, n_pad), jnp.float32).at[:, :fan_out].set(w_in_out)
        self.w1 = w_pad[: self.MULTIMODAL_EMBED_DIM].astype(self.compute_dtype)   # (768, Np)
        self.w2 = w_pad[self.MULTIMODAL_EMBED_DIM:].astype(self.compute_dtype)    # (576, Np)
        self.b_pad = jnp.zeros((1, n_pad), jnp.float32).at[0, :fan_out].set(bias)

    def load_torch_linear(self, weight_out_in, bias):
        """Load real PyTorch nn.Linear params.

        PyTorch nn.Linear.weight is (out_features, in_features); the kernel
        expects (in, out) split at row 768 — transpose here so checkpoints
        are not silently loaded wrong.
        """
        w = jnp.asarray(np.asarray(weight_out_in), jnp.float32).T   # (1344, N)
        b = jnp.asarray(np.asarray(bias), jnp.float32)              # (N,)
        self._set_projector_params(w, b)

    # --- duplicate_mode forward path (fully in-module) ----------------------
    def forward(self, image, text, pose, image_gradcam=None, text_gradcam=None):
        if not self.duplicate_mode:
            # TODO(synk): non-duplicate path requires the frozen BLIP encoder
            # and an externally supplied `decoder`; only the in-module fusion
            # projector (see fuse_and_project) is implemented in Pallas.
            raise NotImplementedError(
                "duplicate_mode=False needs external encoder/decoder")
        y = duplicate_pose_forward(pose)
        return (y, None)

    # --- the in-module fusion compute of encode_and_get_decoder_state -------
    def fuse_and_project(self, multimodal_embeds, gradcam_features,
                         *, return_padded: bool = False,
                         block_m: int | None = None):
        """
        multimodal_embeds: (bs, seq, 768)   -- would come from frozen BLIP
        gradcam_features:  (bs, seq, 576)   -- would come from gradcam model
        returns post_processed_encoder_outputs (compute_dtype):
            (bs, seq, num_hiddens), or the lane-padded (bs*seq, Np) buffer
            if return_padded=True (preferred for jitted consumers: it avoids
            an extra HBM round trip for the slice on this mem-bound path).
        """
        bs, seq, k1 = multimodal_embeds.shape
        _, _, k2 = gradcam_features.shape
        assert k1 == self.MULTIMODAL_EMBED_DIM and k2 == self.GRADCAM_FEATURE_DIM
        M = bs * seq
        # No wrapper-side dtype cast: activations go to the kernel in their
        # native dtype and are cast to bf16 in-kernel (saves an HBM pass).
        x1 = multimodal_embeds.reshape(M, k1)
        x2 = gradcam_features.reshape(M, k2)
        out_pad = projector_forward(
            x1, x2, self.w1, self.w2, self.b_pad,
            block_m=self.block_m if block_m is None else block_m,
            out_dtype=self.compute_dtype)
        if return_padded:
            return out_pad
        # NOTE: in production, run this under the consumer's jit (or use
        # return_padded=True) so the slice+reshape fuses instead of costing a
        # separate output-sized HBM round trip.
        return out_pad[:, : self.num_hiddens].reshape(bs, seq, self.num_hiddens)


# ---------------------------------------------------------------------------
if __name__ == "__main__":
    key = jax.random.PRNGKey(0)
    k_pose, k_img, k_mm, k_gc, k_net = jax.random.split(key, 5)

    # Small shapes consistent with the forward() docstring.
    bs, seq_len, num_coords = 2, 8, 64
    img_len = 16
    num_hiddens = 32

    pose = jax.random.normal(k_pose, (bs, seq_len, num_coords), jnp.float32)
    image = jax.random.normal(k_img, (bs, 3, img_len, img_len), jnp.float32)  # unused by in-module compute
    text = None  # tokenized text would feed the frozen BLIP encoder only

    net = MyNetworkV002Pallas(num_hiddens=num_hiddens, duplicate_mode=True,
                              key=k_net)

    # 1) duplicate_mode forward (exact semantics of the PyTorch else-branch)
    y, state = net.forward(image, text, pose)
    y = jax.block_until_ready(y)
    ref_dup = np.broadcast_to(np.asarray(pose)[:, 0:1, :], pose.shape)
    np.testing.assert_allclose(np.asarray(y), ref_dup, rtol=0, atol=0)
    assert state is None

    # Reference helper: same in-kernel bf16 rounding, f32 accumulation.
    def ref_projector(mm, gc):
        m = mm.shape[0] * mm.shape[1]
        cd = net.compute_dtype
        x1_r = np.asarray(mm.astype(cd).astype(jnp.float32)).reshape(m, 768)
        x2_r = np.asarray(gc.astype(cd).astype(jnp.float32)).reshape(m, 576)
        w1_r = np.asarray(net.w1.astype(jnp.float32))[:, :num_hiddens]
        w2_r = np.asarray(net.w2.astype(jnp.float32))[:, :num_hiddens]
        b_r = np.asarray(net.b_pad)[0, :num_hiddens]
        return x1_r @ w1_r + x2_r @ w2_r + b_r

    # 2) fusion projector (fused concat + Linear 1344 -> num_hiddens, bf16 out)
    seq_mm = 8
    multimodal_embeds = jax.random.normal(k_mm, (bs, seq_mm, 768), jnp.float32)
    gradcam_features = jax.random.normal(k_gc, (bs, seq_mm, 576), jnp.float32)
    proj_out = jax.block_until_ready(
        net.fuse_and_project(multimodal_embeds, gradcam_features))
    M = bs * seq_mm
    np.testing.assert_allclose(
        np.asarray(proj_out.astype(jnp.float32)).reshape(M, num_hiddens),
        ref_projector(multimodal_embeds, gradcam_features),
        rtol=2e-2, atol=5e-2)

    # 3) partial last M-block (M=24 with block_m=16 -> grid=(2,), ragged tail)
    seq_pb = 12
    mm_pb = jax.random.normal(jax.random.fold_in(k_mm, 1), (bs, seq_pb, 768),
                              jnp.float32)
    gc_pb = jax.random.normal(jax.random.fold_in(k_gc, 1), (bs, seq_pb, 576),
                              jnp.float32)
    proj_pb = jax.block_until_ready(
        net.fuse_and_project(mm_pb, gc_pb, block_m=16))
    np.testing.assert_allclose(
        np.asarray(proj_pb.astype(jnp.float32)).reshape(bs * seq_pb, num_hiddens),
        ref_projector(mm_pb, gc_pb),
        rtol=2e-2, atol=5e-2)

    print("KERNEL_OK")
</pallas_src>

<mosaic_0001>
module attributes {stable_mosaic.version = 11 : i64} {
  func.func @_duplicate_kernel(%arg0: i32, %arg1: memref<2x64xf32, #tpu.memory_space<vmem>>, %arg2: memref<2x512xf32, #tpu.memory_space<vmem>>) attributes {dimension_semantics = [#tpu.dimension_semantics<parallel>], iteration_bounds = array<i64: 1>, scalar_prefetch = 0 : i64, scratch_operands = 0 : i64, tpu.core_type = #tpu.core_type<tc>, window_params = [{transform_indices = @transform_0, window_bounds = array<i64: 2, 64>}, {transform_indices = @transform_1, window_bounds = array<i64: 2, 512>}]} {
    %c0 = arith.constant 0 : index
    %c0_0 = arith.constant 0 : index
    %0 = vector.load %arg1[%c0, %c0_0] : memref<2x64xf32, #tpu.memory_space<vmem>>, vector<2x64xf32>
    %1 = tpu.concatenate %0, %0, %0, %0, %0, %0, %0, %0 in 1 : vector<2x64xf32>, vector<2x64xf32>, vector<2x64xf32>, vector<2x64xf32>, vector<2x64xf32>, vector<2x64xf32>, vector<2x64xf32>, vector<2x64xf32> -> vector<2x512xf32>
    %c0_1 = arith.constant 0 : index
    %c0_2 = arith.constant 0 : index
    %2 = vector.load %arg2[%c0_1, %c0_2] : memref<2x512xf32, #tpu.memory_space<vmem>>, vector<2x512xf32>
    tpu.vector_store %arg2[%c0_1, %c0_2], %1 {strides = array<i32>} : memref<2x512xf32, #tpu.memory_space<vmem>>, vector<2x512xf32>,
    return
  }
  func.func @transform_0(%arg0: i32) -> (i32, i32) {
    %c0_i32 = arith.constant 0 : i32
    %c0_i32_0 = arith.constant 0 : i32
    return %arg0, %c0_i32 : i32, i32
  }
  func.func @transform_1(%arg0: i32) -> (i32, i32) {
    %c0_i32 = arith.constant 0 : i32
    %c0_i32_0 = arith.constant 0 : i32
    return %arg0, %c0_i32 : i32, i32
  }
}

</mosaic_0001>

<bundles_post_ra>
// kernel: tpu_custom_call.1
= control target key start
LH: loop header
LB: loop body
LE: loop exit
PB: predicated region body
PF: predicated region fallthrough
CT: control target
= control target key end

     0   :  { %6 = vsyncpa [#allocation3], 0  ;;  %s123_s0 = inlined_call_operand.hbm [shape: f32[2,64], index: 0, kind: input, shape index: {}]   ;;  %s124_s1 = inlined_call_operand.hbm [shape: f32[2,512], index: 1, kind: output, shape index: {}]  }
   0x1   :  { %7 = vsyncpa [#allocation4], 0  ;;  %s103_s6 = smov [#allocation2]  }
   0x2   :  { %s14_s7 = sshll.u32 %s103_s6, 4  ;;  %s15_s7 = int_to_ptr.vmem [resolvable:$true] %s14_s7 }
   0x3   :  { %s67_s8 = scalar_lea.vmem %s15_s7, 32  ;;  %p72_p1 = scmp.lt.s32.totalorder %s15_s7, %s15_s7 }
   0x4   :  { %p68_p0 = scmp.ne.s32.totalorder %s15_s7, %s67_s8  ;;  %p73_p2 = scmp.lt.s32.totalorder %s67_s8, %s67_s8 }
   0x6   :  { %p74_p3 = por %p73_p2, %p72_p1 }
   0x8   :  { %p75_p4 = pnand %p74_p3, %p68_p0 }
   0xa   :  { %78 = shalt.err (!%p75_p4)
}
   0xb   :  { %17 = dma.hbm_to_vmem [thread:$0]  %s123_s0, 32, %s15_s7, [#allocation3]  }
   0xc   :  { %99 = dma.done.wait [#allocation3], 32  }
   0xd   :  { %100 = vsyncadd [#allocation3], 4294967264  ;;  %v21_v0 = vld [vmem:[#allocation2] sm:$0x3]  ;;  %s104_s11 = smov 64   ;;  %v33_v3 = vlaneseq  ;;  %vm26_vm0 = vcmask 523264  }
   0xe   :  { %23 = vrot.lane.b32.xlu0 %v21_v0, %s104_s11  ;;  %v105_v1 = vmov 1983009808   ;;  %s106_s12 = smov [#allocation5]  }
   0xf   :  { %v31_v2 = vunpack.c.l.s4 %v105_v1  ;;  %v34_v5 = vshrl.u32 %v33_v3, 7  ;;  %s46_s13 = sshll.u32 %s106_s12, 4  ;;  %s47_s13 = int_to_ptr.vmem [resolvable:$true] %s46_s13 }
  0x10   :  { %s79_s0 = scalar_lea.vmem %s47_s13, 128  ;;  %p84_p6 = scmp.lt.s32.totalorder %s47_s13, %s47_s13 }
  0x11   :  { %v32_v4 = vunpack.c.0.s8 %v31_v2  ;;  %p80_p5 = scmp.ne.s32.totalorder %s47_s13, %s79_s0  ;;  %p85_p7 = scmp.lt.s32.totalorder %s79_s0, %s79_s0 }
  0x13   :  { %v35_v7 = vsub.s32 %v32_v4, %v34_v5  ;;  %p86_p8 = por %p85_p7, %p84_p6 }
  0x15   :  { %p87_p9 = pnand %p86_p8, %p80_p5 }
  0x80   :  { %v24_v6 = vpop.permute.xlu0 %23 }
  0x81   :  { %v27_v8 = vsel %vm26_vm0, %v21_v0, %v24_v6 }
  0x82   :  { %v29_v9 = vcombine.low %v27_v8, %v27_v8 }
  0x84   :  { %v36_v10 = vrot.slane %v29_v9, %v35_v7 }
  0x86   :  { %v37_v11 = vcombine.low %v36_v10, %v36_v10 }
  0x88   :  { %39 = vst [vmem:[#allocation5] sm:$0xff] %v37_v11 }
  0x89   :  { %90 = shalt.err (!%p87_p9)
}
  0x8a   :  { %49 = dma.vmem_to_hbm [thread:$0]  %s47_s13, 128, %s124_s1, [#allocation4]  }
  0x8b   :  { %101 = dma.done.wait [#allocation4], 128  }
  0x8c   :  { %102 = vsyncadd [#allocation4], 4294967168 }
  0x8d   :  { %53 = vsyncpa [#allocation3], 1 }
  0x8e   :  { %54 = vsyncpa [#allocation4], 1 }

</bundles_post_ra>
